<compile_context>
chip_gen: v6e
topology: v6e:2x2x1
jax: 0.10.0
libtpu: 0.0.40
codegen_flags: <defaults>
</compile_context>

<pallas_src>
import jax
import jax.numpy as jnp
from jax.experimental import pallas as pl
from jax.experimental.pallas import tpu as pltpu


LANE = 128      # lane tile for the weights' out dim
SUBLANE = 16    # round M tiles to 16 (covers f32 (8,...) and bf16 (16,...) sublane tiles)


def _round_up(x, m):
    return (x + m - 1) // m * m


def _cdiv(a, b):
    return (a + b - 1) // b


def _vmem_capacity_bytes():
    """Generation-aware VMEM capacity (v5e/v6e: 128 MiB, v7x: 64 MiB per TC)."""
    try:
        return int(pltpu.get_tpu_info().vmem_capacity_bytes)
    except Exception:
        return 64 << 20  # conservative fallback (v7x per-TensorCore budget)


def _fcnet_fused_kernel(x_ref, *refs):
    """Fused multi-layer (weight-normed Linear + ReLU) forward on one M-tile.

    refs = (w0, b0, w1, b1, ..., o_ref).
    w_i: (row_i, out_pad_i) bf16/f32, weight-norm scale already folded in,
         laid out for lane-dense x @ W.  b_i: (1, out_pad_i) f32.
    The inter-layer activation lives entirely on-chip.
    """
    o_ref = refs[-1]
    wb = refs[:-1]
    n_layers = len(wb) // 2

    h = x_ref[...].astype(jnp.float32)
    for i in range(n_layers):              # static Python loop -> fully unrolled
        w = wb[2 * i][...]
        b = wb[2 * i + 1][...]
        # MXU in the weight dtype (bf16) with f32 accumulation; bias + ReLU in
        # f32 on the VPU (friendly to v5e which lacks bf16 VPU/EUP).
        y = jnp.dot(h.astype(w.dtype), w, preferred_element_type=jnp.float32)
        h = jnp.maximum(y + b, 0.0)
    # Store only the true output columns (less HBM writeback than lane padding).
    o_ref[...] = h[:, : o_ref.shape[1]].astype(o_ref.dtype)


def fcnet_forward_2d(x2d, padded_params, out_dim, *, tm, vmem_cap):
    """Run the fused FCNet kernel on an [M_pad, in_dim] slab (rows padded to tm)."""
    M_pad, in_dim = x2d.shape
    assert M_pad % tm == 0
    n_tiles = M_pad // tm
    x_itemsize = jnp.dtype(x2d.dtype).itemsize
    out_dtype = x2d.dtype
    out_itemsize = jnp.dtype(out_dtype).itemsize

    # x tile: full (unpadded) feature dim, default double buffering.
    in_specs = [pl.BlockSpec((tm, in_dim), lambda i: (i, 0))]
    flat_inputs = [x2d]

    wgt_bytes = 0
    for (w, b) in padded_params:
        ip, op = w.shape
        # Constant-index weight/bias blocks: single-buffered (Buffered(1)),
        # VMEM-resident across the whole M grid.
        in_specs.append(
            pl.BlockSpec((ip, op), lambda i: (0, 0), pipeline_mode=pl.Buffered(1)))
        in_specs.append(
            pl.BlockSpec((1, op), lambda i: (0, 0), pipeline_mode=pl.Buffered(1)))
        flat_inputs.append(w)
        flat_inputs.append(b)
        wgt_bytes += int(w.size) * w.dtype.itemsize + int(b.size) * b.dtype.itemsize

    max_out_pad = max(w.shape[1] for (w, _) in padded_params)

    # --- VMEM budget (generation-aware, with headroom for Mosaic scratch) ---
    cap = int(0.80 * vmem_cap)
    act_bytes = 2 * tm * in_dim * x_itemsize          # double-buffered x tiles
    act_bytes += 2 * tm * out_dim * out_itemsize      # double-buffered out tiles
    live_bytes = 3 * tm * max_out_pad * 4             # live f32 intermediates
    need = wgt_bytes + act_bytes + live_bytes
    if need + (4 << 20) > cap:
        raise ValueError(
            "FCNetPallas: VMEM-resident weights + activation tiles "
            f"({need / 2**20:.1f} MiB) exceed the budget ({cap / 2**20:.1f} MiB); "
            "a K/N-tiled fallback is required for layers this large.")
    vmem_limit = int(min(cap, max(need + (8 << 20), 16 << 20)))

    # --- cost estimate (helps XLA schedule around the custom call) ---
    flops = 0
    bytes_accessed = M_pad * in_dim * x_itemsize + M_pad * out_dim * out_itemsize
    for (w, b) in padded_params:
        flops += 2 * M_pad * w.shape[0] * w.shape[1]
    bytes_accessed += wgt_bytes

    return pl.pallas_call(
        _fcnet_fused_kernel,
        out_shape=jax.ShapeDtypeStruct((M_pad, out_dim), out_dtype),
        grid_spec=pltpu.PrefetchScalarGridSpec(
            num_scalar_prefetch=0,
            grid=(n_tiles,),
            in_specs=in_specs,
            out_specs=pl.BlockSpec((tm, out_dim), lambda i: (i, 0)),
        ),
        compiler_params=pltpu.CompilerParams(
            dimension_semantics=("parallel",),
            vmem_limit_bytes=vmem_limit,
        ),
        cost_estimate=pl.CostEstimate(
            flops=int(flops), transcendentals=0, bytes_accessed=int(bytes_accessed)),
    )(*flat_inputs)


class FCNetPallas:
    """JAX/Pallas equivalent of FCNet(dims, act='ReLU', dropout=0)."""

    def __init__(self, dims, key, compute_dtype=jnp.bfloat16):
        # compute_dtype=bf16: MXU-native on v5e/v6e/v7x and halves weight bytes.
        # Accumulation / bias / ReLU stay f32 (see kernel).
        self.dims = list(dims)
        self.compute_dtype = compute_dtype
        self.params = []
        for i in range(len(dims) - 1):
            in_dim, out_dim = dims[i], dims[i + 1]
            key, kw, kb = jax.random.split(key, 3)
            # PyTorch Linear default init: U(-1/sqrt(in_dim), 1/sqrt(in_dim))
            bound = 1.0 / (in_dim ** 0.5)
            v = jax.random.uniform(kw, (out_dim, in_dim), jnp.float32, -bound, bound)
            b = jax.random.uniform(kb, (out_dim,), jnp.float32, -bound, bound)
            # weight_norm(dim=None): g is a scalar, initialized to ||v||_F
            g = jnp.sqrt(jnp.sum(v ** 2))
            self.params.append((v, g, b))
        self._prepare()

    def _prepare(self):
        """Precompute once: fold g/||v||_F into W, transpose to (in, out), pad.

        Layer 0 keeps the true in_dim on the weight's first dim (matches the
        unpadded x feature dim); later layers match the 128-padded width of the
        previous activation (padded rows are zero -> exact).  Only the out
        (lane) dim is padded to 128.
        """
        self._padded = []
        prev_out_pad = None
        for idx, (v, g, b) in enumerate(self.params):
            out_dim, in_dim = v.shape
            scale = g.astype(jnp.float32) / jnp.sqrt(jnp.sum(v.astype(jnp.float32) ** 2))
            w = (scale * v.astype(jnp.float32)).T                # (in, out)
            rows = in_dim if idx == 0 else prev_out_pad
            out_pad = _round_up(out_dim, LANE)
            wp = jnp.zeros((rows, out_pad), self.compute_dtype)
            wp = wp.at[:in_dim, :out_dim].set(w.astype(self.compute_dtype))
            bp = jnp.zeros((1, out_pad), jnp.float32)
            bp = bp.at[0, :out_dim].set(b.astype(jnp.float32))
            self._padded.append((wp, bp))
            prev_out_pad = out_pad

    def __call__(self, x):
        lead = x.shape[:-1]
        in_dim = x.shape[-1]
        assert in_dim == self.dims[0]
        x2d = x.reshape(-1, in_dim)
        M = x2d.shape[0]
        out_dim = self.dims[-1]

        # --- generation-aware tile sizing ---
        vmem_cap = _vmem_capacity_bytes()
        cap = int(0.80 * vmem_cap)
        x_itemsize = jnp.dtype(x2d.dtype).itemsize
        max_out_pad = max(w.shape[1] for (w, _) in self._padded)
        wgt_bytes = sum(int(w.size) * w.dtype.itemsize + int(b.size) * b.dtype.itemsize
                        for (w, b) in self._padded)
        per_row = (2 * in_dim * x_itemsize          # x double-buffered
                   + 2 * out_dim * x_itemsize       # out double-buffered
                   + 3 * max_out_pad * 4)           # live f32 intermediates
        avail = cap - wgt_bytes - (8 << 20)
        if avail <= per_row * SUBLANE:
            raise ValueError("FCNetPallas: weights too large for the fused VMEM-resident kernel")
        tm_max = min(avail // per_row, 2048)
        tm_max = max((tm_max // SUBLANE) * SUBLANE, SUBLANE)

        # --- M tiling: minimal padding waste; >=2 tiles for v7x megacore ---
        n_tiles = _cdiv(M, tm_max)
        if M >= 512 and n_tiles < 2:
            n_tiles = 2            # keep both v7x TensorCores busy
        tm = _round_up(_cdiv(M, n_tiles), SUBLANE)
        M_pad = n_tiles * tm
        if M_pad > M:
            x2d = jnp.pad(x2d, ((0, M_pad - M), (0, 0)))   # rows only; no K padding

        out = fcnet_forward_2d(x2d, self._padded, out_dim, tm=tm, vmem_cap=vmem_cap)
        out = out[:M]
        return out.reshape(*lead, out_dim)

    def reference(self, x):
        """Pure-JAX f32 reference matching the PyTorch forward."""
        h = x
        for (v, g, b) in self.params:
            w = g * v / jnp.sqrt(jnp.sum(v ** 2))
            h = jnp.maximum(h @ w.T + b, 0.0)
        return h


if __name__ == "__main__":
    key = jax.random.PRNGKey(0)
    k_in, k_net = jax.random.split(key)

    batch, seq = 2, 8
    dims = [32, 64, 32]                     # FCNet([32, 64, 32])
    x = jax.random.normal(k_in, (batch, seq, dims[0]), jnp.float32)

    net = FCNetPallas(dims, k_net)          # bf16 MXU path, f32 accumulation
    out = jax.block_until_ready(net(x))

    ref = net.reference(x)
    assert out.shape == (batch, seq, dims[-1])
    # bf16 MXU path vs f32 reference -> loosened tolerance
    max_err = float(jnp.max(jnp.abs(out - ref)))
    assert jnp.allclose(out, ref, atol=3e-2, rtol=3e-2), f"mismatch vs reference (max err {max_err})"

    print("KERNEL_OK")
</pallas_src>

<mosaic_0001>
module attributes {stable_mosaic.version = 11 : i64} {
  func.func @_fcnet_fused_kernel(%arg0: i32, %arg1: memref<16x32xf32, #tpu.memory_space<vmem>>, %arg2: memref<32x128xbf16, #tpu.memory_space<vmem>>, %arg3: memref<1x128xf32, #tpu.memory_space<vmem>>, %arg4: memref<128x128xbf16, #tpu.memory_space<vmem>>, %arg5: memref<1x128xf32, #tpu.memory_space<vmem>>, %arg6: memref<16x32xf32, #tpu.memory_space<vmem>>) attributes {dimension_semantics = [#tpu.dimension_semantics<parallel>], iteration_bounds = array<i64: 1>, scalar_prefetch = 0 : i64, scratch_operands = 0 : i64, tpu.core_type = #tpu.core_type<tc>, window_params = [{transform_indices = @transform_0, window_bounds = array<i64: 16, 32>}, {pipeline_mode = #tpu.pipeline_mode<synchronous>, transform_indices = @transform_1, window_bounds = array<i64: 32, 128>}, {pipeline_mode = #tpu.pipeline_mode<synchronous>, transform_indices = @transform_2, window_bounds = array<i64: 1, 128>}, {pipeline_mode = #tpu.pipeline_mode<synchronous>, transform_indices = @transform_3, window_bounds = array<i64: 128, 128>}, {pipeline_mode = #tpu.pipeline_mode<synchronous>, transform_indices = @transform_4, window_bounds = array<i64: 1, 128>}, {transform_indices = @transform_5, window_bounds = array<i64: 16, 32>}]} {
    %c0 = arith.constant 0 : index
    %c0_0 = arith.constant 0 : index
    %0 = vector.load %arg1[%c0, %c0_0] : memref<16x32xf32, #tpu.memory_space<vmem>>, vector<16x32xf32>
    %c0_1 = arith.constant 0 : index
    %c0_2 = arith.constant 0 : index
    %1 = vector.load %arg2[%c0_1, %c0_2] : memref<32x128xbf16, #tpu.memory_space<vmem>>, vector<32x128xbf16>
    %c0_3 = arith.constant 0 : index
    %c0_4 = arith.constant 0 : index
    %2 = vector.load %arg3[%c0_3, %c0_4] : memref<1x128xf32, #tpu.memory_space<vmem>>, vector<1x128xf32>
    %3 = arith.truncf %0 : vector<16x32xf32> to vector<16x32xbf16>
    %cst = arith.constant dense<0.000000e+00> : vector<16x128xf32>
    %4 = tpu.matmul %3, %1, %cst {dimension_numbers = #tpu.dot_dimension_numbers<[1], [0], [0], [1], [0, 0, 1, 1], [], []>} : vector<16x32xbf16>, vector<32x128xbf16>, vector<16x128xf32> -> vector<16x128xf32>
    %5 = vector.broadcast %2 : vector<1x128xf32> to vector<16x128xf32>
    %6 = arith.addf %4, %5 : vector<16x128xf32>
    %cst_5 = arith.constant 0.000000e+00 : f32
    %7 = vector.broadcast %cst_5 : f32 to vector<16x128xf32>
    %8 = arith.maximumf %6, %7 : vector<16x128xf32>
    %c0_6 = arith.constant 0 : index
    %c0_7 = arith.constant 0 : index
    %9 = vector.load %arg4[%c0_6, %c0_7] : memref<128x128xbf16, #tpu.memory_space<vmem>>, vector<128x128xbf16>
    %c0_8 = arith.constant 0 : index
    %c0_9 = arith.constant 0 : index
    %10 = vector.load %arg5[%c0_8, %c0_9] : memref<1x128xf32, #tpu.memory_space<vmem>>, vector<1x128xf32>
    %11 = arith.truncf %8 : vector<16x128xf32> to vector<16x128xbf16>
    %cst_10 = arith.constant dense<0.000000e+00> : vector<16x128xf32>
    %12 = tpu.matmul %11, %9, %cst_10 {dimension_numbers = #tpu.dot_dimension_numbers<[1], [0], [0], [1], [0, 0, 1, 1], [], []>} : vector<16x128xbf16>, vector<128x128xbf16>, vector<16x128xf32> -> vector<16x128xf32>
    %13 = vector.broadcast %10 : vector<1x128xf32> to vector<16x128xf32>
    %14 = arith.addf %12, %13 : vector<16x128xf32>
    %cst_11 = arith.constant 0.000000e+00 : f32
    %15 = vector.broadcast %cst_11 : f32 to vector<16x128xf32>
    %16 = arith.maximumf %14, %15 : vector<16x128xf32>
    %17 = vector.extract_strided_slice %16 {offsets = [0, 0], sizes = [16, 32], strides = [1, 1]} : vector<16x128xf32> to vector<16x32xf32>
    %c0_12 = arith.constant 0 : index
    %c0_13 = arith.constant 0 : index
    %18 = vector.load %arg6[%c0_12, %c0_13] : memref<16x32xf32, #tpu.memory_space<vmem>>, vector<16x32xf32>
    tpu.vector_store %arg6[%c0_12, %c0_13], %17 {strides = array<i32>} : memref<16x32xf32, #tpu.memory_space<vmem>>, vector<16x32xf32>,
    return
  }
  func.func @transform_0(%arg0: i32) -> (i32, i32) {
    %c0_i32 = arith.constant 0 : i32
    %c0_i32_0 = arith.constant 0 : i32
    return %arg0, %c0_i32 : i32, i32
  }
  func.func @transform_1(%arg0: i32) -> (i32, i32) {
    %c0_i32 = arith.constant 0 : i32
    %c0_i32_0 = arith.constant 0 : i32
    %c0_i32_1 = arith.constant 0 : i32
    return %c0_i32, %c0_i32_0 : i32, i32
  }
  func.func @transform_2(%arg0: i32) -> (i32, i32) {
    %c0_i32 = arith.constant 0 : i32
    %c0_i32_0 = arith.constant 0 : i32
    %c0_i32_1 = arith.constant 0 : i32
    return %c0_i32, %c0_i32_0 : i32, i32
  }
  func.func @transform_3(%arg0: i32) -> (i32, i32) {
    %c0_i32 = arith.constant 0 : i32
    %c0_i32_0 = arith.constant 0 : i32
    %c0_i32_1 = arith.constant 0 : i32
    return %c0_i32, %c0_i32_0 : i32, i32
  }
  func.func @transform_4(%arg0: i32) -> (i32, i32) {
    %c0_i32 = arith.constant 0 : i32
    %c0_i32_0 = arith.constant 0 : i32
    %c0_i32_1 = arith.constant 0 : i32
    return %c0_i32, %c0_i32_0 : i32, i32
  }
  func.func @transform_5(%arg0: i32) -> (i32, i32) {
    %c0_i32 = arith.constant 0 : i32
    %c0_i32_0 = arith.constant 0 : i32
    return %arg0, %c0_i32 : i32, i32
  }
}

</mosaic_0001>

<bundles_post_ra>
// kernel: tpu_custom_call.1
= control target key start
LH: loop header
LB: loop body
LE: loop exit
PB: predicated region body
PF: predicated region fallthrough
CT: control target
= control target key end

     0   :  { %10 = vsyncpa [#allocation3], 0  ;;  %s497_s0 = inlined_call_operand.hbm [shape: f32[16,32], index: 0, kind: input, shape index: {}]   ;;  %s498_s1 = inlined_call_operand.hbm [shape: bf16[32,128], index: 1, kind: input, shape index: {}]   ;;  %s499_s2 = inlined_call_operand.vmem [shape: f32[1,128], index: 2, kind: input, shape index: {}]   ;;  %s500_s3 = inlined_call_operand.hbm [shape: bf16[128,128], index: 3, kind: input, shape index: {}]   ;;  %s501_s4 = inlined_call_operand.vmem [shape: f32[1,128], index: 4, kind: input, shape index: {}]   ;;  %s502_s5 = inlined_call_operand.hbm [shape: f32[16,32], index: 5, kind: output, shape index: {}]  }
   0x1   :  { %11 = vsyncpa [#allocation6], 0 }
   0x2   :  { %12 = vsyncpa [#allocation4], 0  ;;  %s430_s18 = smov [#allocation5]  }
   0x3   :  { %s30_s19 = sshll.u32 %s430_s18, 4  ;;  %s31_s19 = int_to_ptr.vmem [resolvable:$true] %s30_s19 }
   0x4   :  { %s352_s20 = scalar_lea.vmem %s31_s19, 256  ;;  %p357_p1 = scmp.lt.s32.totalorder %s31_s19, %s31_s19 }
   0x5   :  { %p353_p0 = scmp.ne.s32.totalorder %s31_s19, %s352_s20  ;;  %p358_p2 = scmp.lt.s32.totalorder %s352_s20, %s352_s20 }
   0x7   :  { %p359_p3 = por %p358_p2, %p357_p1 }
   0x9   :  { %p360_p4 = pnand %p359_p3, %p353_p0 }
   0xb   :  { %363 = shalt.err (!%p360_p4)
}
   0xc   :  { %s431_s21 = smov 64   ;;  %s432_s22 = smov 4  }
   0xd   :  { %36 = dma.hbm_to_vmem [thread:$0]  %s498_s1, 256, %s31_s19, [#allocation6], %s431_s21, %s431_s21, %s432_s22  }
   0xe   :  { %s433_s25 = smov [#allocation2]  }
   0xf   :  { %s18_s26 = sshll.u32 %s433_s25, 4  ;;  %s19_s26 = int_to_ptr.vmem [resolvable:$true] %s18_s26 }
  0x10   :  { %s372_s27 = scalar_lea.vmem %s19_s26, 256  ;;  %p377_p6 = scmp.lt.s32.totalorder %s19_s26, %s19_s26 }
  0x11   :  { %p373_p5 = scmp.ne.s32.totalorder %s19_s26, %s372_s27  ;;  %p378_p7 = scmp.lt.s32.totalorder %s372_s27, %s372_s27 }
  0x13   :  { %p379_p8 = por %p378_p7, %p377_p6 }
  0x15   :  { %p380_p9 = pnand %p379_p8, %p373_p5 }
  0x17   :  { %383 = shalt.err (!%p380_p9)
}
  0x18   :  { %s434_s28 = smov 128   ;;  %s435_s29 = smov 8  }
  0x19   :  { %24 = dma.hbm_to_vmem [thread:$0]  %s497_s0, 256, %s19_s26, [#allocation3], %s434_s28, %s434_s28, %s435_s29  }
  0x1a   :  { %s436_s1 = smov [#allocation7]  }
  0x1b   :  { %s44_s7 = sshll.u32 %s436_s1, 4  ;;  %s45_s7 = int_to_ptr.vmem [resolvable:$true] %s44_s7 }
  0x1c   :  { %s392_s8 = scalar_lea.vmem %s45_s7, 1024  ;;  %p397_p11 = scmp.lt.s32.totalorder %s45_s7, %s45_s7 }
  0x1d   :  { %p393_p10 = scmp.ne.s32.totalorder %s45_s7, %s392_s8  ;;  %p398_p12 = scmp.lt.s32.totalorder %s392_s8, %s392_s8 }
  0x1f   :  { %p399_p13 = por %p398_p12, %p397_p11 }
  0x21   :  { %p400_p0 = pnand %p399_p13, %p393_p10 }
  0x23   :  { %403 = shalt.err (!%p400_p0)
}
  0x24   :  { %50 = dma.hbm_to_vmem [thread:$0]  %s500_s3, 1024, %s45_s7, [#allocation6], %s431_s21, %s431_s21, %s432_s22  }
  0x25   :  { %424 = dma.done.wait [#allocation3], 256  }
  0x26   :  { %425 = vsyncadd [#allocation3], 4294967040 }
  0x27   :  { %426 = dma.done.wait [#allocation6], 1280  }
  0x28   :  { %427 = vsyncadd [#allocation6], 4294966016  ;;  %v437_v0 = vmov 0.0   ;;  %vm438_vm0 = vmmov 0   ;;  %v334_v1 = vld [vmem:[#allocation5 + $0x8] sm:$0xff]   ;;  %v335_v2 = vld [vmem:[#allocation5] sm:$0xff]  }
  0x29   :  { %296 = vmatprep.subr.bf16.mxu0 %v437_v0  ;;  %300 = vmatprep.mubr.msk.bf16.mxu0 %vm438_vm0, %v437_v0  ;;  %v63_v3 = vld [vmem:[#allocation2] sm:$0xff]  ;;  %v64_v4 = vld [vmem:[#allocation2 + $0x8] sm:$0xff]  ;;  %v336_v5 = vld [vmem:[#allocation7 + $0x38] sm:$0xff]   ;;  %vm89_vm1 = vcmask 261120  }
  0x2a   :  { %304 = vmatprep.subr.bf16.mxu1 %v437_v0  ;;  %320 = vmatprep.mubr.msk.bf16.mxu1 %vm438_vm0, %v437_v0  ;;  %v70_v6 = vpack.c.bf16 %v64_v4, %v63_v3  ;;  %v337_v7 = vld [vmem:[#allocation7 + $0x30] sm:$0xff]   ;;  %v338_v8 = vld [vmem:[#allocation7 + $0x28] sm:$0xff]   ;;  %v339_v9 = vld [vmem:[#allocation7 + $0x20] sm:$0xff]  }
  0x2b   :  { %297 = vmatpush3.bf16.msra.mxu0 %v334_v1  ;;  %305 = vmatpush3.bf16.msra.mxu1 %v336_v5  ;;  %v340_v10 = vld [vmem:[#allocation7 + $0x18] sm:$0xff]   ;;  %v341_v11 = vld [vmem:[#allocation7 + $0x10] sm:$0xff]   ;;  %v342_v12 = vld [vmem:[#allocation7 + $0x8] sm:$0xff]  }
  0x2c   :  { %298 = vmatprep.subr.bf16.mxu0 %v437_v0  ;;  %306 = vmatprep.subr.bf16.mxu1 %v437_v0  ;;  %v343_v13 = vld [vmem:[#allocation7] sm:$0xff]  }
  0x2d   :  { %v271_v14 = vld [vmem:[%s499_s2] ss:$0 sm:$0xff]  ;;  %s439_s2 = smov [#allocation8]  }
  0x2e   :  { %v275_v24 = vld [vmem:[%s501_s4] ss:$0 sm:$0xff]  ;;  %s258_s13 = sshll.u32 %s439_s2, 4  ;;  %s259_s13 = int_to_ptr.vmem [resolvable:$true] %s258_s13 }
  0x2f   :  { %299 = vmatpush3.bf16.msra.mxu0 %v335_v2  ;;  %307 = vmatpush3.bf16.msra.mxu1 %v337_v7  ;;  %s404_s14 = scalar_lea.vmem %s259_s13, 256  ;;  %p409_p2 = scmp.lt.s32.totalorder %s259_s13, %s259_s13 }
  0x30   :  { %308 = vmatprep.subr.bf16.mxu1 %v437_v0  ;;  %p405_p1 = scmp.ne.s32.totalorder %s259_s13, %s404_s14  ;;  %p410_p3 = scmp.lt.s32.totalorder %s404_s14, %s404_s14 }
  0x32   :  { %301 = vmatmul.mubr.msk.bf16.vlgmr.msra.gmra.mxu0 %vm89_vm1, %v70_v6  ;;  %p411_p4 = por %p410_p3, %p409_p2 }
  0x33   :  { %309 = vmatpush3.bf16.msra.mxu1 %v338_v8 }
  0x34   :  { %310 = vmatprep.subr.bf16.mxu1 %v437_v0  ;;  %p412_p5 = pnand %p411_p4, %p405_p1 }
  0x37   :  { %311 = vmatpush3.bf16.msra.mxu1 %v339_v9 }
  0x38   :  { %312 = vmatprep.subr.bf16.mxu1 %v437_v0 }
  0x3b   :  { %313 = vmatpush3.bf16.msra.mxu1 %v340_v10 }
  0x3c   :  { %314 = vmatprep.subr.bf16.mxu1 %v437_v0 }
  0x3f   :  { %315 = vmatpush3.bf16.msra.mxu1 %v341_v11 }
  0x40   :  { %316 = vmatprep.subr.bf16.mxu1 %v437_v0 }
  0x43   :  { %317 = vmatpush3.bf16.msra.mxu1 %v342_v12 }
  0x44   :  { %318 = vmatprep.subr.bf16.mxu1 %v437_v0 }
  0x47   :  { %319 = vmatpush3.bf16.msra.mxu1 %v343_v13 }
  0xf2   :  { %v127_v15 = vpop.f32.mrf.mxu0 }
  0xf3   :  { %v128_v17 = vadd.f32 %v271_v14, %v127_v15 }
  0xf4   :  { %v302_v16 = vpop.f32.mrf.mxu0 }
  0xf5   :  { %v134_v21 = vmax.f32 %v128_v17, 0.0 }
  0xf6   :  { %v130_v18 = vpop.f32.mrf.mxu0 }
  0xf7   :  { %v131_v19 = vadd.f32 %v271_v14, %v130_v18 }
  0xf8   :  { %v303_v20 = vpop.f32.mrf.mxu0 }
  0xf9   :  { %v135_v22 = vmax.f32 %v131_v19, 0.0 }
  0xfb   :  { %v153_v23 = vpack.c.bf16 %v135_v22, %v134_v21 }
  0xfd   :  { %321 = vmatmul.mubr.bf16.vlgmr.msra.gmra.mxu1 %v153_v23 }
 0x1bd   :  { %v242_v25 = vpop.f32.mrf.mxu1 }
 0x1be   :  { %v243_v26 = vadd.f32 %v275_v24, %v242_v25 }
 0x1bf   :  { %v322_v27 = vpop.f32.mrf.mxu1 }
 0x1c0   :  { %v249_v28 = vmax.f32 %v243_v26, 0.0 }
 0x1c1   :  { %v245_v29 = vpop.f32.mrf.mxu1 }
 0x1c2   :  { %251 = vst.msk [vmem:[#allocation8] sm:$0xff] %vm89_vm1, %v249_v28  ;;  %v246_v30 = vadd.f32 %v275_v24, %v245_v29 }
 0x1c3   :  { %v323_v31 = vpop.f32.mrf.mxu1 }
 0x1c4   :  { %v250_v32 = vmax.f32 %v246_v30, 0.0 }
 0x1c6   :  { %252 = vst.msk [vmem:[#allocation8 + $0x8] sm:$0xff] %vm89_vm1, %v250_v32 }
 0x1c7   :  { %415 = shalt.err (!%p412_p5)
}
 0x1c8   :  { %264 = dma.vmem_to_hbm [thread:$0]  %s259_s13, 256, %s502_s5, [#allocation4], %s434_s28, %s434_s28, %s435_s29  }
 0x1c9   :  { %428 = dma.done.wait [#allocation4], 256  }
 0x1ca   :  { %429 = vsyncadd [#allocation4], 4294967040 }
 0x1cb   :  { %268 = vsyncpa [#allocation3], 1 }
 0x1cc   :  { %269 = vsyncpa [#allocation6], 1 }
 0x1cd   :  { %270 = vsyncpa [#allocation4], 1 }

</bundles_post_ra>
